<compile_context>
chip_gen: v5e
topology: v5e:2x2
jax: 0.10.0
libtpu: 0.0.40
codegen_flags: <defaults>
</compile_context>

<pallas_src>
import math
import jax
import jax.numpy as jnp
from jax.experimental import pallas as pl
from jax.experimental.pallas import tpu as pltpu

# ----------------------------- config (small) -----------------------------
BATCH = 2
SEQ = 8
HIDDEN = 32
NUM_HEADS = 4
HEAD_DIM = HIDDEN // NUM_HEADS          # 8
INTERMEDIATE = 64
MAX_POS = 16
RMS_EPS = 1e-6
DTYPE = jnp.float32


# ----------------------------- fused layer kernel -------------------------
def _decoder_layer_kernel(x_ref, mask_ref, cos_ref, sin_ref, p_ref,
                          ln1_ref, wqkv_ref, wo_ref, ln2_ref, wgu_ref, wd_ref,
                          out_ref, kv_ref):
    f32 = jnp.float32
    x = x_ref[0].astype(f32)                                   # (S, H)

    # ---- RMSNorm 1 -------------------------------------------------------
    var = jnp.mean(x * x, axis=-1, keepdims=True)
    normed = x * jax.lax.rsqrt(var + RMS_EPS) * ln1_ref[...].astype(f32)

    # ---- fused QKV projection, per-head layout (3*NH, S, HD) --------------
    w_qkv = wqkv_ref[...].astype(f32)                          # (3*NH, H, HD)
    normed_b = jnp.broadcast_to(normed[None], (3 * NUM_HEADS, SEQ, HIDDEN))
    qkvh = jnp.einsum('psk,pkd->psd', normed_b, w_qkv,
                      preferred_element_type=f32)              # (3*NH, S, HD)
    qh = qkvh[:NUM_HEADS]                                      # (NH, S, HD)
    kh = qkvh[NUM_HEADS:2 * NUM_HEADS]
    vh = qkvh[2 * NUM_HEADS:]

    # ---- RoPE (rotate_half == x @ P, P hoisted & passed in) ---------------
    cos = cos_ref[0].astype(f32)[None]                         # (1, S, HD)
    sin = sin_ref[0].astype(f32)[None]
    P = jnp.broadcast_to(p_ref[...].astype(f32)[None],
                         (NUM_HEADS, HEAD_DIM, HEAD_DIM))
    q_rot = qh * cos + jnp.einsum('hsd,hde->hse', qh, P,
                                  preferred_element_type=f32) * sin
    k_rot = kh * cos + jnp.einsum('hsd,hde->hse', kh, P,
                                  preferred_element_type=f32) * sin

    # ---- SDPA with additive mask (all heads at once) ----------------------
    mask = jnp.maximum(mask_ref[0].astype(f32), jnp.finfo(f32).min)   # (S, S)
    scale = 1.0 / math.sqrt(HEAD_DIM)
    scores = jnp.einsum('hqd,hkd->hqk', q_rot, k_rot,
                        preferred_element_type=f32) * scale + mask[None]
    m = jnp.max(scores, axis=-1, keepdims=True)
    p = jnp.exp(scores - m)
    denom = jnp.sum(p, axis=-1, keepdims=True)
    p = p * pl.reciprocal(denom, approx=True)
    attn = jnp.einsum('hqk,hkd->hqd', p, vh,
                      preferred_element_type=f32)              # (NH, S, HD)

    # ---- o_proj (per-head weights, summed over heads) + residual ----------
    wo = wo_ref[...].astype(f32)                               # (NH, HD, H)
    attn_o = jnp.einsum('hqd,hdo->hqo', attn, wo, preferred_element_type=f32)
    h = x + jnp.sum(attn_o, axis=0)                            # (S, H)

    # ---- RMSNorm 2 + SiLU-gated MLP + residual ----------------------------
    var2 = jnp.mean(h * h, axis=-1, keepdims=True)
    normed2 = h * jax.lax.rsqrt(var2 + RMS_EPS) * ln2_ref[...].astype(f32)
    wgu = wgu_ref[...].astype(f32)                             # (2, H, I)
    normed2_b = jnp.broadcast_to(normed2[None], (2, SEQ, HIDDEN))
    gu = jnp.einsum('psk,pki->psi', normed2_b, wgu,
                    preferred_element_type=f32)                # (2, S, I)
    g, u = gu[0], gu[1]
    act = (g * jax.nn.sigmoid(g)) * u                          # SiLU(gate)*up
    out = h + jnp.dot(act, wd_ref[...].astype(f32), preferred_element_type=f32)

    # ---- writes ------------------------------------------------------------
    out_ref[0] = out.astype(out_ref.dtype)
    kv_ref[0, 0] = k_rot.astype(kv_ref.dtype)                  # cached K (rotated)
    kv_ref[1, 0] = vh.astype(kv_ref.dtype)                     # cached V


# ----------------------------- layer wrapper ------------------------------
def llama_decoder_layer(hidden_states, attention_mask, position_ids, params):
    """Forward of LlamaDecoderLayer for valid_past_index == 0 (prefill)."""
    B, S, H = hidden_states.shape

    # One-time weight re-arrangement (XLA, outside the hot path).
    wqkv_heads = params["wqkv"].reshape(3 * NUM_HEADS, HEAD_DIM, H) \
                               .transpose(0, 2, 1)             # (3*NH, H, HD)
    wo_heads = params["wo"].T.reshape(NUM_HEADS, HEAD_DIM, H)  # (NH, HD, H)
    wgu = jnp.stack([params["wg"].T, params["wu"].T], axis=0)  # (2, H, I)
    wd_t = params["wd"].T                                      # (I, H)

    cos_g = params["cos_cached"][position_ids]                 # (B, S, HD)
    sin_g = params["sin_cached"][position_ids]
    mask = jnp.squeeze(attention_mask, axis=1)                 # (B, S, S)

    # rotate_half permutation, hoisted: x @ P == concat(-x[half:], x[:half])
    half = HEAD_DIM // 2
    row = jnp.arange(HEAD_DIM)[:, None]
    col = jnp.arange(HEAD_DIM)[None, :]
    P = (jnp.where(row == col + half, -1.0, 0.0)
         + jnp.where(row + half == col, 1.0, 0.0)).astype(DTYPE)   # (HD, HD)

    out, past_key_value = pl.pallas_call(
        _decoder_layer_kernel,
        out_shape=(
            jax.ShapeDtypeStruct((B, S, H), hidden_states.dtype),
            jax.ShapeDtypeStruct((2, B, NUM_HEADS, S, HEAD_DIM),
                                 hidden_states.dtype),
        ),
        grid=(B,),
        in_specs=[
            pl.BlockSpec((1, S, H), lambda b: (b, 0, 0)),                  # x
            pl.BlockSpec((1, S, S), lambda b: (b, 0, 0)),                  # mask
            pl.BlockSpec((1, S, HEAD_DIM), lambda b: (b, 0, 0)),           # cos
            pl.BlockSpec((1, S, HEAD_DIM), lambda b: (b, 0, 0)),           # sin
            pl.BlockSpec((HEAD_DIM, HEAD_DIM), lambda b: (0, 0)),          # P
            pl.BlockSpec((1, H), lambda b: (0, 0)),                        # ln1
            pl.BlockSpec((3 * NUM_HEADS, H, HEAD_DIM), lambda b: (0, 0, 0)),  # wqkv
            pl.BlockSpec((NUM_HEADS, HEAD_DIM, H), lambda b: (0, 0, 0)),   # wo
            pl.BlockSpec((1, H), lambda b: (0, 0)),                        # ln2
            pl.BlockSpec((2, H, INTERMEDIATE), lambda b: (0, 0, 0)),       # wg|wu
            pl.BlockSpec((INTERMEDIATE, H), lambda b: (0, 0)),             # wd
        ],
        out_specs=(
            pl.BlockSpec((1, S, H), lambda b: (b, 0, 0)),
            pl.BlockSpec((2, 1, NUM_HEADS, S, HEAD_DIM),
                         lambda b: (0, b, 0, 0, 0)),
        ),
        compiler_params=pltpu.CompilerParams(
            dimension_semantics=("parallel",)),
    )(hidden_states, mask, cos_g, sin_g, P,
      params["ln1_w"].reshape(1, H), wqkv_heads, wo_heads,
      params["ln2_w"].reshape(1, H), wgu, wd_t)

    # TODO(synk): the valid_past_index != 0 decode path (dynamic KV-cache
    #             slicing / in-place cache update) is not implemented; only the
    #             prefill path is reproduced.
    return out, past_key_value


# ----------------------------- reference (plain JAX) ----------------------
def reference(hidden_states, attention_mask, position_ids, params):
    B, S, H = hidden_states.shape
    x = hidden_states.astype(jnp.float32)

    def rms(t, w):
        var = jnp.mean(t * t, axis=-1, keepdims=True)
        return w * (t * jax.lax.rsqrt(var + RMS_EPS))

    h1 = rms(x, params["ln1_w"])
    qkv = h1 @ params["wqkv"].T
    qkv = qkv.reshape(B, S, 3, NUM_HEADS, HEAD_DIM).transpose(2, 0, 3, 1, 4)
    q, k, v = qkv[0], qkv[1], qkv[2]
    cos = params["cos_cached"][position_ids][:, None]          # (B,1,S,hd)
    sin = params["sin_cached"][position_ids][:, None]

    def rot_half(t):
        return jnp.concatenate([-t[..., HEAD_DIM // 2:], t[..., :HEAD_DIM // 2]],
                               axis=-1)

    qr = q * cos + rot_half(q) * sin
    kr = k * cos + rot_half(k) * sin
    mask = jnp.maximum(attention_mask, jnp.finfo(jnp.float32).min)
    scores = jnp.einsum("bhqd,bhkd->bhqk", qr, kr) / math.sqrt(HEAD_DIM) + mask
    p = jax.nn.softmax(scores, axis=-1)
    ao = jnp.einsum("bhqk,bhkd->bhqd", p, v)
    ao = ao.transpose(0, 2, 1, 3).reshape(B, S, H) @ params["wo"].T
    h = x + ao
    h2 = rms(h, params["ln2_w"])
    g = h2 @ params["wg"].T
    u = h2 @ params["wu"].T
    mlp = (g * jax.nn.sigmoid(g) * u) @ params["wd"].T
    return h + mlp, jnp.stack([kr, v], axis=0)


# ----------------------------- main ---------------------------------------
if __name__ == "__main__":
    key = jax.random.PRNGKey(0)
    kq, ko, kg, ku, kd, kx = jax.random.split(key, 6)
    scale = 0.02
    params = {
        "wqkv": jax.random.normal(kq, (3 * HIDDEN, HIDDEN), DTYPE) * scale,
        "wo": jax.random.normal(ko, (HIDDEN, HIDDEN), DTYPE) * scale,
        "wg": jax.random.normal(kg, (INTERMEDIATE, HIDDEN), DTYPE) * scale,
        "wu": jax.random.normal(ku, (INTERMEDIATE, HIDDEN), DTYPE) * scale,
        "wd": jax.random.normal(kd, (HIDDEN, INTERMEDIATE), DTYPE) * scale,
        "ln1_w": jnp.ones((HIDDEN,), DTYPE),
        "ln2_w": jnp.ones((HIDDEN,), DTYPE),
    }
    # rotary tables (LlamaRotaryEmbedding buffers)
    inv_freq = 1.0 / (10000.0 ** (jnp.arange(0, HEAD_DIM, 2, dtype=jnp.float32)
                                  / HEAD_DIM))
    t = jnp.arange(MAX_POS, dtype=jnp.float32)
    freqs = jnp.einsum("i,j->ij", t, inv_freq)
    emb = jnp.concatenate([freqs, freqs], axis=-1)
    params["cos_cached"] = jnp.cos(emb).astype(DTYPE)          # (MAX_POS, hd)
    params["sin_cached"] = jnp.sin(emb).astype(DTYPE)

    hidden_states = jax.random.normal(kx, (BATCH, SEQ, HIDDEN), DTYPE)
    position_ids = jnp.broadcast_to(jnp.arange(SEQ, dtype=jnp.int32), (BATCH, SEQ))
    causal = jnp.tril(jnp.ones((SEQ, SEQ), dtype=bool))
    attention_mask = jnp.where(causal, 0.0, -1e9).astype(DTYPE)[None, None]
    attention_mask = jnp.broadcast_to(attention_mask, (BATCH, 1, SEQ, SEQ))

    out, present_kv = llama_decoder_layer(hidden_states, attention_mask,
                                          position_ids, params)
    out = jax.block_until_ready(out)
    present_kv = jax.block_until_ready(present_kv)

    ref_out, ref_kv = reference(hidden_states, attention_mask, position_ids, params)
    assert jnp.allclose(out, ref_out, rtol=2e-3, atol=2e-3), "hidden_states mismatch"
    assert jnp.allclose(present_kv, ref_kv, rtol=2e-3, atol=2e-3), "kv cache mismatch"

    print("KERNEL_OK")
</pallas_src>

<mosaic_0001>
module attributes {stable_mosaic.version = 11 : i64} {
  func.func @_decoder_layer_kernel(%arg0: i32, %arg1: memref<1x8x32xf32, #tpu.memory_space<vmem>>, %arg2: memref<1x8x8xf32, #tpu.memory_space<vmem>>, %arg3: memref<1x8x8xf32, #tpu.memory_space<vmem>>, %arg4: memref<1x8x8xf32, #tpu.memory_space<vmem>>, %arg5: memref<8x8xf32, #tpu.memory_space<vmem>>, %arg6: memref<1x32xf32, #tpu.memory_space<vmem>>, %arg7: memref<12x32x8xf32, #tpu.memory_space<vmem>>, %arg8: memref<4x8x32xf32, #tpu.memory_space<vmem>>, %arg9: memref<1x32xf32, #tpu.memory_space<vmem>>, %arg10: memref<2x32x64xf32, #tpu.memory_space<vmem>>, %arg11: memref<64x32xf32, #tpu.memory_space<vmem>>, %arg12: memref<1x8x32xf32, #tpu.memory_space<vmem>>, %arg13: memref<2x1x4x8x8xf32, #tpu.memory_space<vmem>>) attributes {dimension_semantics = [#tpu.dimension_semantics<parallel>], iteration_bounds = array<i64: 2>, scalar_prefetch = 0 : i64, scratch_operands = 0 : i64, tpu.core_type = #tpu.core_type<tc>, window_params = [{transform_indices = @transform_0, window_bounds = array<i64: 1, 8, 32>}, {transform_indices = @transform_1, window_bounds = array<i64: 1, 8, 8>}, {transform_indices = @transform_2, window_bounds = array<i64: 1, 8, 8>}, {transform_indices = @transform_3, window_bounds = array<i64: 1, 8, 8>}, {pipeline_mode = #tpu.pipeline_mode<synchronous>, transform_indices = @transform_4, window_bounds = array<i64: 8, 8>}, {pipeline_mode = #tpu.pipeline_mode<synchronous>, transform_indices = @transform_5, window_bounds = array<i64: 1, 32>}, {pipeline_mode = #tpu.pipeline_mode<synchronous>, transform_indices = @transform_6, window_bounds = array<i64: 12, 32, 8>}, {pipeline_mode = #tpu.pipeline_mode<synchronous>, transform_indices = @transform_7, window_bounds = array<i64: 4, 8, 32>}, {pipeline_mode = #tpu.pipeline_mode<synchronous>, transform_indices = @transform_8, window_bounds = array<i64: 1, 32>}, {pipeline_mode = #tpu.pipeline_mode<synchronous>, transform_indices = @transform_9, window_bounds = array<i64: 2, 32, 64>}, {pipeline_mode = #tpu.pipeline_mode<synchronous>, transform_indices = @transform_10, window_bounds = array<i64: 64, 32>}, {transform_indices = @transform_11, window_bounds = array<i64: 1, 8, 32>}, {transform_indices = @transform_12, window_bounds = array<i64: 2, 1, 4, 8, 8>}]} {
    %c0 = arith.constant 0 : index
    %c0_0 = arith.constant 0 : index
    %c0_1 = arith.constant 0 : index
    %0 = vector.load %arg1[%c0, %c0_0, %c0_1] : memref<1x8x32xf32, #tpu.memory_space<vmem>>, vector<1x8x32xf32>
    %1 = vector.shape_cast %0 : vector<1x8x32xf32> to vector<8x32xf32>
    %2 = arith.mulf %1, %1 : vector<8x32xf32>
    %cst = arith.constant dense<0.000000e+00> : vector<8xf32>
    %3 = vector.multi_reduction <add>, %2, %cst [1] : vector<8x32xf32> to vector<8xf32>
    %4 = vector.shape_cast %3 : vector<8xf32> to vector<8x1xf32>
    %cst_2 = arith.constant 3.200000e+01 : f32
    %5 = vector.broadcast %cst_2 : f32 to vector<8x1xf32>
    %6 = arith.divf %4, %5 : vector<8x1xf32>
    %cst_3 = arith.constant 9.99999997E-7 : f32
    %7 = vector.broadcast %cst_3 : f32 to vector<8x1xf32>
    %8 = arith.addf %6, %7 : vector<8x1xf32>
    %9 = math.rsqrt %8 : vector<8x1xf32>
    %10 = vector.broadcast %9 : vector<8x1xf32> to vector<8x32xf32>
    %11 = arith.mulf %1, %10 : vector<8x32xf32>
    %c0_4 = arith.constant 0 : index
    %c0_5 = arith.constant 0 : index
    %12 = vector.load %arg6[%c0_4, %c0_5] : memref<1x32xf32, #tpu.memory_space<vmem>>, vector<1x32xf32>
    %13 = vector.broadcast %12 : vector<1x32xf32> to vector<8x32xf32>
    %14 = arith.mulf %11, %13 : vector<8x32xf32>
    %c0_6 = arith.constant 0 : index
    %c0_7 = arith.constant 0 : index
    %c0_8 = arith.constant 0 : index
    %15 = vector.load %arg7[%c0_6, %c0_7, %c0_8] : memref<12x32x8xf32, #tpu.memory_space<vmem>>, vector<12x32x8xf32>
    %16 = vector.shape_cast %14 : vector<8x32xf32> to vector<1x8x32xf32>
    %17 = vector.shape_cast %16 : vector<1x8x32xf32> to vector<1x8x32xf32>
    %18 = vector.broadcast %17 : vector<1x8x32xf32> to vector<12x8x32xf32>
    "tpu.trace_start"() <{level = 10 : i32, message = "psk,pkd->psd"}> : () -> ()
    %cst_9 = arith.constant dense<0.000000e+00> : vector<12x8x8xf32>
    %19 = tpu.matmul %18, %15, %cst_9 {dimension_numbers = #tpu.dot_dimension_numbers<[2], [1], [1], [2], [0, 0, 0, 1, 1, 2], [0], [0]>} : vector<12x8x32xf32>, vector<12x32x8xf32>, vector<12x8x8xf32> -> vector<12x8x8xf32>
    "tpu.trace_stop"() : () -> ()
    %20 = vector.extract_strided_slice %19 {offsets = [0, 0, 0], sizes = [4, 8, 8], strides = [1, 1, 1]} : vector<12x8x8xf32> to vector<4x8x8xf32>
    %21 = vector.extract_strided_slice %19 {offsets = [4, 0, 0], sizes = [4, 8, 8], strides = [1, 1, 1]} : vector<12x8x8xf32> to vector<4x8x8xf32>
    %22 = vector.extract_strided_slice %19 {offsets = [8, 0, 0], sizes = [4, 8, 8], strides = [1, 1, 1]} : vector<12x8x8xf32> to vector<4x8x8xf32>
    %c0_10 = arith.constant 0 : index
    %c0_11 = arith.constant 0 : index
    %c0_12 = arith.constant 0 : index
    %23 = vector.load %arg3[%c0_10, %c0_11, %c0_12] : memref<1x8x8xf32, #tpu.memory_space<vmem>>, vector<1x8x8xf32>
    %24 = vector.shape_cast %23 : vector<1x8x8xf32> to vector<8x8xf32>
    %25 = vector.shape_cast %24 : vector<8x8xf32> to vector<1x8x8xf32>
    %c0_13 = arith.constant 0 : index
    %c0_14 = arith.constant 0 : index
    %c0_15 = arith.constant 0 : index
    %26 = vector.load %arg4[%c0_13, %c0_14, %c0_15] : memref<1x8x8xf32, #tpu.memory_space<vmem>>, vector<1x8x8xf32>
    %27 = vector.shape_cast %26 : vector<1x8x8xf32> to vector<8x8xf32>
    %28 = vector.shape_cast %27 : vector<8x8xf32> to vector<1x8x8xf32>
    %c0_16 = arith.constant 0 : index
    %c0_17 = arith.constant 0 : index
    %29 = vector.load %arg5[%c0_16, %c0_17] : memref<8x8xf32, #tpu.memory_space<vmem>>, vector<8x8xf32>
    %30 = vector.shape_cast %29 : vector<8x8xf32> to vector<1x8x8xf32>
    %31 = vector.shape_cast %30 : vector<1x8x8xf32> to vector<1x8x8xf32>
    %32 = vector.broadcast %31 : vector<1x8x8xf32> to vector<4x8x8xf32>
    %33 = vector.broadcast %25 : vector<1x8x8xf32> to vector<4x8x8xf32>
    %34 = arith.mulf %20, %33 : vector<4x8x8xf32>
    "tpu.trace_start"() <{level = 10 : i32, message = "hsd,hde->hse"}> : () -> ()
    %cst_18 = arith.constant dense<0.000000e+00> : vector<4x8x8xf32>
    %35 = tpu.matmul %20, %32, %cst_18 {dimension_numbers = #tpu.dot_dimension_numbers<[2], [1], [1], [2], [0, 0, 0, 1, 1, 2], [0], [0]>} : vector<4x8x8xf32>, vector<4x8x8xf32>, vector<4x8x8xf32> -> vector<4x8x8xf32>
    "tpu.trace_stop"() : () -> ()
    %36 = vector.broadcast %28 : vector<1x8x8xf32> to vector<4x8x8xf32>
    %37 = arith.mulf %35, %36 : vector<4x8x8xf32>
    %38 = arith.addf %34, %37 : vector<4x8x8xf32>
    %39 = vector.broadcast %25 : vector<1x8x8xf32> to vector<4x8x8xf32>
    %40 = arith.mulf %21, %39 : vector<4x8x8xf32>
    "tpu.trace_start"() <{level = 10 : i32, message = "hsd,hde->hse"}> : () -> ()
    %cst_19 = arith.constant dense<0.000000e+00> : vector<4x8x8xf32>
    %41 = tpu.matmul %21, %32, %cst_19 {dimension_numbers = #tpu.dot_dimension_numbers<[2], [1], [1], [2], [0, 0, 0, 1, 1, 2], [0], [0]>} : vector<4x8x8xf32>, vector<4x8x8xf32>, vector<4x8x8xf32> -> vector<4x8x8xf32>
    "tpu.trace_stop"() : () -> ()
    %42 = vector.broadcast %28 : vector<1x8x8xf32> to vector<4x8x8xf32>
    %43 = arith.mulf %41, %42 : vector<4x8x8xf32>
    %44 = arith.addf %40, %43 : vector<4x8x8xf32>
    %c0_20 = arith.constant 0 : index
    %c0_21 = arith.constant 0 : index
    %c0_22 = arith.constant 0 : index
    %45 = vector.load %arg2[%c0_20, %c0_21, %c0_22] : memref<1x8x8xf32, #tpu.memory_space<vmem>>, vector<1x8x8xf32>
    %46 = vector.shape_cast %45 : vector<1x8x8xf32> to vector<8x8xf32>
    %cst_23 = arith.constant -3.40282347E+38 : f32
    %47 = vector.broadcast %cst_23 : f32 to vector<8x8xf32>
    %48 = arith.maximumf %46, %47 : vector<8x8xf32>
    "tpu.trace_start"() <{level = 10 : i32, message = "hqd,hkd->hqk"}> : () -> ()
    %cst_24 = arith.constant dense<0.000000e+00> : vector<4x8x8xf32>
    %49 = tpu.matmul %38, %44, %cst_24 {dimension_numbers = #tpu.dot_dimension_numbers<[2], [2], [1], [1], [0, 0, 0, 1, 1, 1], [0], [0]>} : vector<4x8x8xf32>, vector<4x8x8xf32>, vector<4x8x8xf32> -> vector<4x8x8xf32>
    "tpu.trace_stop"() : () -> ()
    %cst_25 = arith.constant 0.353553385 : f32
    %50 = vector.broadcast %cst_25 : f32 to vector<4x8x8xf32>
    %51 = arith.mulf %49, %50 : vector<4x8x8xf32>
    %52 = vector.shape_cast %48 : vector<8x8xf32> to vector<1x8x8xf32>
    %53 = vector.broadcast %52 : vector<1x8x8xf32> to vector<4x8x8xf32>
    %54 = arith.addf %51, %53 : vector<4x8x8xf32>
    %cst_26 = arith.constant dense<0xFF800000> : vector<4x8xf32>
    %55 = vector.multi_reduction <maximumf>, %54, %cst_26 [2] : vector<4x8x8xf32> to vector<4x8xf32>
    %56 = vector.shape_cast %55 : vector<4x8xf32> to vector<4x8x1xf32>
    %57 = vector.broadcast %56 : vector<4x8x1xf32> to vector<4x8x8xf32>
    %58 = arith.subf %54, %57 : vector<4x8x8xf32>
    %59 = math.exp %58 : vector<4x8x8xf32>
    %cst_27 = arith.constant dense<0.000000e+00> : vector<4x8xf32>
    %60 = vector.multi_reduction <add>, %59, %cst_27 [2] : vector<4x8x8xf32> to vector<4x8xf32>
    %61 = vector.shape_cast %60 : vector<4x8xf32> to vector<4x8x1xf32>
    %62 = tpu.reciprocal %61 {approx = true} : vector<4x8x1xf32> -> vector<4x8x1xf32>
    %63 = vector.broadcast %62 : vector<4x8x1xf32> to vector<4x8x8xf32>
    %64 = arith.mulf %59, %63 : vector<4x8x8xf32>
    "tpu.trace_start"() <{level = 10 : i32, message = "hqk,hkd->hqd"}> : () -> ()
    %cst_28 = arith.constant dense<0.000000e+00> : vector<4x8x8xf32>
    %65 = tpu.matmul %64, %22, %cst_28 {dimension_numbers = #tpu.dot_dimension_numbers<[2], [1], [1], [2], [0, 0, 0, 1, 1, 2], [0], [0]>} : vector<4x8x8xf32>, vector<4x8x8xf32>, vector<4x8x8xf32> -> vector<4x8x8xf32>
    "tpu.trace_stop"() : () -> ()
    %c0_29 = arith.constant 0 : index
    %c0_30 = arith.constant 0 : index
    %c0_31 = arith.constant 0 : index
    %66 = vector.load %arg8[%c0_29, %c0_30, %c0_31] : memref<4x8x32xf32, #tpu.memory_space<vmem>>, vector<4x8x32xf32>
    "tpu.trace_start"() <{level = 10 : i32, message = "hqd,hdo->hqo"}> : () -> ()
    %cst_32 = arith.constant dense<0.000000e+00> : vector<4x8x32xf32>
    %67 = tpu.matmul %65, %66, %cst_32 {dimension_numbers = #tpu.dot_dimension_numbers<[2], [1], [1], [2], [0, 0, 0, 1, 1, 2], [0], [0]>} : vector<4x8x8xf32>, vector<4x8x32xf32>, vector<4x8x32xf32> -> vector<4x8x32xf32>
    "tpu.trace_stop"() : () -> ()
    %cst_33 = arith.constant dense<0.000000e+00> : vector<8x32xf32>
    %68 = vector.multi_reduction <add>, %67, %cst_33 [0] : vector<4x8x32xf32> to vector<8x32xf32>
    %69 = arith.addf %1, %68 : vector<8x32xf32>
    %70 = arith.mulf %69, %69 : vector<8x32xf32>
    %cst_34 = arith.constant dense<0.000000e+00> : vector<8xf32>
    %71 = vector.multi_reduction <add>, %70, %cst_34 [1] : vector<8x32xf32> to vector<8xf32>
    %72 = vector.shape_cast %71 : vector<8xf32> to vector<8x1xf32>
    %cst_35 = arith.constant 3.200000e+01 : f32
    %73 = vector.broadcast %cst_35 : f32 to vector<8x1xf32>
    %74 = arith.divf %72, %73 : vector<8x1xf32>
    %cst_36 = arith.constant 9.99999997E-7 : f32
    %75 = vector.broadcast %cst_36 : f32 to vector<8x1xf32>
    %76 = arith.addf %74, %75 : vector<8x1xf32>
    %77 = math.rsqrt %76 : vector<8x1xf32>
    %78 = vector.broadcast %77 : vector<8x1xf32> to vector<8x32xf32>
    %79 = arith.mulf %69, %78 : vector<8x32xf32>
    %c0_37 = arith.constant 0 : index
    %c0_38 = arith.constant 0 : index
    %80 = vector.load %arg9[%c0_37, %c0_38] : memref<1x32xf32, #tpu.memory_space<vmem>>, vector<1x32xf32>
    %81 = vector.broadcast %80 : vector<1x32xf32> to vector<8x32xf32>
    %82 = arith.mulf %79, %81 : vector<8x32xf32>
    %c0_39 = arith.constant 0 : index
    %c0_40 = arith.constant 0 : index
    %c0_41 = arith.constant 0 : index
    %83 = vector.load %arg10[%c0_39, %c0_40, %c0_41] : memref<2x32x64xf32, #tpu.memory_space<vmem>>, vector<2x32x64xf32>
    %84 = vector.shape_cast %82 : vector<8x32xf32> to vector<1x8x32xf32>
    %85 = vector.shape_cast %84 : vector<1x8x32xf32> to vector<1x8x32xf32>
    %86 = vector.broadcast %85 : vector<1x8x32xf32> to vector<2x8x32xf32>
    "tpu.trace_start"() <{level = 10 : i32, message = "psk,pki->psi"}> : () -> ()
    %cst_42 = arith.constant dense<0.000000e+00> : vector<2x8x64xf32>
    %87 = tpu.matmul %86, %83, %cst_42 {dimension_numbers = #tpu.dot_dimension_numbers<[2], [1], [1], [2], [0, 0, 0, 1, 1, 2], [0], [0]>} : vector<2x8x32xf32>, vector<2x32x64xf32>, vector<2x8x64xf32> -> vector<2x8x64xf32>
    "tpu.trace_stop"() : () -> ()
    %88 = vector.extract_strided_slice %87 {offsets = [0, 0, 0], sizes = [1, 8, 64], strides = [1, 1, 1]} : vector<2x8x64xf32> to vector<1x8x64xf32>
    %89 = vector.shape_cast %88 : vector<1x8x64xf32> to vector<8x64xf32>
    %90 = vector.extract_strided_slice %87 {offsets = [1, 0, 0], sizes = [1, 8, 64], strides = [1, 1, 1]} : vector<2x8x64xf32> to vector<1x8x64xf32>
    %91 = vector.shape_cast %90 : vector<1x8x64xf32> to vector<8x64xf32>
    %92 = arith.negf %89 : vector<8x64xf32>
    %93 = math.exp %92 : vector<8x64xf32>
    %cst_43 = arith.constant 1.000000e+00 : f32
    %94 = vector.broadcast %cst_43 : f32 to vector<8x64xf32>
    %95 = arith.addf %94, %93 : vector<8x64xf32>
    %96 = arith.divf %94, %95 : vector<8x64xf32>
    %97 = arith.mulf %89, %96 : vector<8x64xf32>
    %98 = arith.mulf %97, %91 : vector<8x64xf32>
    %c0_44 = arith.constant 0 : index
    %c0_45 = arith.constant 0 : index
    %99 = vector.load %arg11[%c0_44, %c0_45] : memref<64x32xf32, #tpu.memory_space<vmem>>, vector<64x32xf32>
    %cst_46 = arith.constant dense<0.000000e+00> : vector<8x32xf32>
    %100 = tpu.matmul %98, %99, %cst_46 {dimension_numbers = #tpu.dot_dimension_numbers<[1], [0], [0], [1], [0, 0, 1, 1], [], []>} : vector<8x64xf32>, vector<64x32xf32>, vector<8x32xf32> -> vector<8x32xf32>
    %101 = arith.addf %69, %100 : vector<8x32xf32>
    %c0_47 = arith.constant 0 : index
    %c0_48 = arith.constant 0 : index
    %c0_49 = arith.constant 0 : index
    %102 = vector.load %arg12[%c0_47, %c0_48, %c0_49] : memref<1x8x32xf32, #tpu.memory_space<vmem>>, vector<1x8x32xf32>
    %103 = vector.shape_cast %102 : vector<1x8x32xf32> to vector<8x32xf32>
    %104 = vector.shape_cast %101 : vector<8x32xf32> to vector<1x8x32xf32>
    tpu.vector_store %arg12[%c0_47, %c0_48, %c0_49], %104 {strides = array<i32>} : memref<1x8x32xf32, #tpu.memory_space<vmem>>, vector<1x8x32xf32>,
    %c0_50 = arith.constant 0 : index
    %c0_51 = arith.constant 0 : index
    %c0_52 = arith.constant 0 : index
    %c0_53 = arith.constant 0 : index
    %c0_54 = arith.constant 0 : index
    %105 = vector.load %arg13[%c0_50, %c0_51, %c0_52, %c0_53, %c0_54] : memref<2x1x4x8x8xf32, #tpu.memory_space<vmem>>, vector<1x1x4x8x8xf32>
    %106 = vector.shape_cast %105 : vector<1x1x4x8x8xf32> to vector<4x8x8xf32>
    %107 = vector.shape_cast %44 : vector<4x8x8xf32> to vector<1x1x4x8x8xf32>
    tpu.vector_store %arg13[%c0_50, %c0_51, %c0_52, %c0_53, %c0_54], %107 {strides = array<i32>} : memref<2x1x4x8x8xf32, #tpu.memory_space<vmem>>, vector<1x1x4x8x8xf32>,
    %c1 = arith.constant 1 : index
    %c0_55 = arith.constant 0 : index
    %c0_56 = arith.constant 0 : index
    %c0_57 = arith.constant 0 : index
    %c0_58 = arith.constant 0 : index
    %108 = vector.load %arg13[%c1, %c0_55, %c0_56, %c0_57, %c0_58] : memref<2x1x4x8x8xf32, #tpu.memory_space<vmem>>, vector<1x1x4x8x8xf32>
    %109 = vector.shape_cast %108 : vector<1x1x4x8x8xf32> to vector<4x8x8xf32>
    %110 = vector.shape_cast %22 : vector<4x8x8xf32> to vector<1x1x4x8x8xf32>
    tpu.vector_store %arg13[%c1, %c0_55, %c0_56, %c0_57, %c0_58], %110 {strides = array<i32>} : memref<2x1x4x8x8xf32, #tpu.memory_space<vmem>>, vector<1x1x4x8x8xf32>,
    return
  }
  func.func @transform_0(%arg0: i32) -> (i32, i32, i32) {
    %c0_i32 = arith.constant 0 : i32
    %c0_i32_0 = arith.constant 0 : i32
    %c0_i32_1 = arith.constant 0 : i32
    return %arg0, %c0_i32, %c0_i32_0 : i32, i32, i32
  }
  func.func @transform_1(%arg0: i32) -> (i32, i32, i32) {
    %c0_i32 = arith.constant 0 : i32
    %c0_i32_0 = arith.constant 0 : i32
    %c0_i32_1 = arith.constant 0 : i32
    return %arg0, %c0_i32, %c0_i32_0 : i32, i32, i32
  }
  func.func @transform_2(%arg0: i32) -> (i32, i32, i32) {
    %c0_i32 = arith.constant 0 : i32
    %c0_i32_0 = arith.constant 0 : i32
    %c0_i32_1 = arith.constant 0 : i32
    return %arg0, %c0_i32, %c0_i32_0 : i32, i32, i32
  }
  func.func @transform_3(%arg0: i32) -> (i32, i32, i32) {
    %c0_i32 = arith.constant 0 : i32
    %c0_i32_0 = arith.constant 0 : i32
    %c0_i32_1 = arith.constant 0 : i32
    return %arg0, %c0_i32, %c0_i32_0 : i32, i32, i32
  }
  func.func @transform_4(%arg0: i32) -> (i32, i32) {
    %c0_i32 = arith.constant 0 : i32
    %c0_i32_0 = arith.constant 0 : i32
    %c0_i32_1 = arith.constant 0 : i32
    return %c0_i32, %c0_i32_0 : i32, i32
  }
  func.func @transform_5(%arg0: i32) -> (i32, i32) {
    %c0_i32 = arith.constant 0 : i32
    %c0_i32_0 = arith.constant 0 : i32
    %c0_i32_1 = arith.constant 0 : i32
    return %c0_i32, %c0_i32_0 : i32, i32
  }
  func.func @transform_6(%arg0: i32) -> (i32, i32, i32) {
    %c0_i32 = arith.constant 0 : i32
    %c0_i32_0 = arith.constant 0 : i32
    %c0_i32_1 = arith.constant 0 : i32
    %c0_i32_2 = arith.constant 0 : i32
    return %c0_i32, %c0_i32_0, %c0_i32_1 : i32, i32, i32
  }
  func.func @transform_7(%arg0: i32) -> (i32, i32, i32) {
    %c0_i32 = arith.constant 0 : i32
    %c0_i32_0 = arith.constant 0 : i32
    %c0_i32_1 = arith.constant 0 : i32
    %c0_i32_2 = arith.constant 0 : i32
    return %c0_i32, %c0_i32_0, %c0_i32_1 : i32, i32, i32
  }
  func.func @transform_8(%arg0: i32) -> (i32, i32) {
    %c0_i32 = arith.constant 0 : i32
    %c0_i32_0 = arith.constant 0 : i32
    %c0_i32_1 = arith.constant 0 : i32
    return %c0_i32, %c0_i32_0 : i32, i32
  }
  func.func @transform_9(%arg0: i32) -> (i32, i32, i32) {
    %c0_i32 = arith.constant 0 : i32
    %c0_i32_0 = arith.constant 0 : i32
    %c0_i32_1 = arith.constant 0 : i32
    %c0_i32_2 = arith.constant 0 : i32
    return %c0_i32, %c0_i32_0, %c0_i32_1 : i32, i32, i32
  }
  func.func @transform_10(%arg0: i32) -> (i32, i32) {
    %c0_i32 = arith.constant 0 : i32
    %c0_i32_0 = arith.constant 0 : i32
    %c0_i32_1 = arith.constant 0 : i32
    return %c0_i32, %c0_i32_0 : i32, i32
  }
  func.func @transform_11(%arg0: i32) -> (i32, i32, i32) {
    %c0_i32 = arith.constant 0 : i32
    %c0_i32_0 = arith.constant 0 : i32
    %c0_i32_1 = arith.constant 0 : i32
    return %arg0, %c0_i32, %c0_i32_0 : i32, i32, i32
  }
  func.func @transform_12(%arg0: i32) -> (i32, i32, i32, i32, i32) {
    %c0_i32 = arith.constant 0 : i32
    %c0_i32_0 = arith.constant 0 : i32
    %c0_i32_1 = arith.constant 0 : i32
    %c0_i32_2 = arith.constant 0 : i32
    %c0_i32_3 = arith.constant 0 : i32
    return %c0_i32, %arg0, %c0_i32_0, %c0_i32_1, %c0_i32_2 : i32, i32, i32, i32, i32
  }
}

</mosaic_0001>

<bundles_post_ra>
// kernel: tpu_custom_call.1
= control target key start
LH: loop header
LB: loop body
LE: loop exit
PB: predicated region body
PF: predicated region fallthrough
CT: control target
= control target key end

     0   :  { %s2399_s0 = inlined_call_operand.vmem [shape: f32[2,8,32], index: 0, kind: input, shape index: {}]   ;;  %s2400_s1 = inlined_call_operand.vmem [shape: f32[2,8,8], index: 1, kind: input, shape index: {}]   ;;  %s2401_s2 = inlined_call_operand.vmem [shape: f32[2,8,8], index: 2, kind: input, shape index: {}]   ;;  %s2402_s3 = inlined_call_operand.vmem [shape: f32[2,8,8], index: 3, kind: input, shape index: {}]   ;;  %s2403_s4 = inlined_call_operand.vmem [shape: f32[8,8], index: 4, kind: input, shape index: {}]   ;;  %s2404_s5 = inlined_call_operand.vmem [shape: f32[1,32], index: 5, kind: input, shape index: {}]   ;;  %s2405_s6 = inlined_call_operand.vmem [shape: f32[12,32,8], index: 6, kind: input, shape index: {}]   ;;  %s2406_s7 = inlined_call_operand.vmem [shape: f32[4,8,32], index: 7, kind: input, shape index: {}]   ;;  %s2407_s8 = inlined_call_operand.vmem [shape: f32[1,32], index: 8, kind: input, shape index: {}]   ;;  %s2408_s9 = inlined_call_operand.vmem [shape: f32[2,32,64], index: 9, kind: input, shape index: {}]   ;;  %s2409_s10 = inlined_call_operand.vmem [shape: f32[64,32], index: 10, kind: input, shape index: {}]   ;;  %s2410_s11 = inlined_call_operand.hbm [shape: f32[2,8,32], index: 11, kind: output, shape index: {0}]   ;;  %s2411_s12 = inlined_call_operand.hbm [shape: f32[2,2,4,8,8], index: 12, kind: output, shape index: {1}]  }
   0x1   :  { %2412 = sst [smem:[#allocation11_spill]] %s2399_s0 }
   0x2   :  { %2413 = sst [smem:[#allocation12_spill]] %s2400_s1 }
   0x3   :  { %2414 = sst [smem:[#allocation13_spill]] %s2401_s2 }
   0x4   :  { %18 = vsyncpa [#allocation3], 0 }
   0x5   :  { %20 = vsyncpa [#allocation3 + $0x1], 0 }
   0x6   :  { %21 = vsyncpa [#allocation5], 0 }
   0x7   :  { %23 = vsyncpa [#allocation5 + $0x1], 0  ;;  %s1974_s21 = smov 0   ;;  %s1976_s22 = smov 0  }
   0x8   :  { %s1978_s23 = smov 0   ;;  %s1980_s24 = smov 0  }
   0x9 LB: > { %s1995_s25 = sadd.s32 4294967295, %s1899_s24   ;;  %s1685_s26 = sadd.s32 4294967294, %s1899_s24   ;;  %s1899_s24 = sphi %s1980_s24, %s2425_s24   ;;  %s1895_s23 = sphi %s1978_s23, %s2424_s23   ;;  %s1891_s22 = sphi %s1976_s22, %s2423_s22   ;;  %s1887_s21 = sphi %s1974_s21, %s2422_s21  }
   0xa   : > { %s1999_s27 = sadd.s32 1, %s1899_s24   ;;  %s287_s28 = sadd.s32 1, %s1895_s23 }
   0xb   : > { %s284_s29 = ssub.s32 %s1899_s24, %s1999_s27  ;;  %p297_p0 = scmp.ne.s32.totalorder %s1895_s23, %s1891_s22 }
   0xc   : > { %p285_p1 = scmp.eq.s32.totalorder %s284_s29, 0  ;;  %p298_p2 = scmp.eq.s32.totalorder %s1995_s25, 1 }
   0xd   : > { %p303_p3 = scmp.ne.s32.totalorder %s1891_s22, %s1887_s21  ;;  %p304_p4 = scmp.eq.s32.totalorder %s1685_s26, 1 }
   0xe   : > { %s2010_s30 = scalar_select %p285_p1, %s1895_s23, %s287_s28  }
   0xf   : > { %p2012_p5 = por %p298_p2, %p297_p0  ;;  %p2016_p6 = por %p304_p4, %p303_p3 }
  0x10   : > { %2415 = sst [smem:[#allocation10_spill]] %s2010_s30  ;;  %p1688_p7 = scmp.ge.s32.totalorder %s1899_s24, 1 }
  0x11   : > { %p397_p8 = scmp.lt.s32.totalorder %s1899_s24, 3 }
  0x13   : > { %p398_p9 = pnand %p1688_p7, %p397_p8 }
  0x14   : > { %p455_p10 = scmp.lt.s32.totalorder (!%p398_p9), %s1995_s25, 1  ;;  %s2418_s0 = sld [smem:[#allocation11_spill]] (!%p398_p9) }
  0x15   : > { %401 = sbr.rel (%p398_p9) target bundleno = 1574 (0x626), region = 64  ;;  %s2192_s18 = sand.u32 (!%p398_p9), 1, %s1891_s22  }
  0x16   : > { %s1690_s26 = sshll.u32 (!%p398_p9), %s2192_s18, 6  ;;  %s2419_s2 = sld [smem:[#allocation13_spill]] (!%p398_p9) }
  0x17   : > { %s2210_s28 = scalar_lea.vmem (!%p398_p9), [#allocation4], %s1690_s26  ;;  %s2420_s1 = sld [smem:[#allocation12_spill]] (!%p398_p9) }
  0x18   : > { %s1741_s30 = sshll.u32 (!%p398_p9), %s1995_s25, 3 }
  0x19   : > { %s1512_s20 = scalar_lea.hbm (!%p398_p9), %s2410_s11, %s1741_s30 }
  0x1a   : > { %s456_s15 = scalar_select %p455_p10, %s1995_s25, 1  ;;  %vm473_vm0 = vcmask 261120   ;;  %v1901_v3 = vmov 32.0   ;;  %v505_v7 = vld [vmem:[%s2405_s6 + $0x18] sm:$0xff]  ;;  %v504_v11 = vld [vmem:[%s2405_s6 + $0x10] sm:$0xff]  ;;  %v503_v16 = vld [vmem:[%s2405_s6 + $0x8] sm:$0xff] }
  0x1b   : > { %1807 = vrcp.f32 %v1901_v3  ;;  %v509_v8 = vld [vmem:[%s2405_s6 + $0x38] sm:$0xff]  ;;  %565 = vmatpush.msra.mxu0 %v505_v7  ;;  %v508_v12 = vld [vmem:[%s2405_s6 + $0x30] sm:$0xff]  ;;  %v507_v17 = vld [vmem:[%s2405_s6 + $0x28] sm:$0xff]  ;;  %vm800_vm5 = vcmask 64512   ;;  %vm1461_vm13 = vcmask 523264  }
  0x1c   : > { %s2024_s16 = sshll.u32 %s456_s15, 3  ;;  %v513_v9 = vld [vmem:[%s2405_s6 + $0x58] sm:$0xff]  ;;  %585 = vmatpush.msra.mxu1 %v509_v8  ;;  %v512_v13 = vld [vmem:[%s2405_s6 + $0x50] sm:$0xff]  ;;  %v511_v18 = vld [vmem:[%s2405_s6 + $0x48] sm:$0xff]  ;;  %s1497_s15 = scalar_lea.sflag [#allocation3], %s2192_s18 }
  0x1d   : > { %s458_s19 = scalar_lea.vmem %s2418_s0, %s2024_s16  ;;  %v529_v10 = vld [vmem:[%s2405_s6 + $0xd8] sm:$0xff]  ;;  %605 = vmatpush.msra.mxu3 %v513_v9  ;;  %566 = vmatpush.msra.mxu0 %v504_v11  ;;  %v528_v15 = vld [vmem:[%s2405_s6 + $0xd0] sm:$0xff]  ;;  %v527_v19 = vld [vmem:[%s2405_s6 + $0xc8] sm:$0xff]  ;;  %s470_s17 = scalar_lea.vmem %s2402_s3, %s2024_s16 }
  0x1e   : > { %v2030_v0 = vld [vmem:[%s458_s19] sm:$0xff]  ;;  %685 = vmatpush.msra.mxu2 %v529_v10  ;;  %586 = vmatpush.msra.mxu1 %v508_v12  ;;  %v517_v25 = vld [vmem:[%s2405_s6 + $0x78] sm:$0xff]  ;;  %v516_v29 = vld [vmem:[%s2405_s6 + $0x70] sm:$0xff]  ;;  %s466_s19 = scalar_lea.vmem %s2419_s2, %s2024_s16  ;;  %s462_s29 = scalar_lea.vmem %s2420_s1, %s2024_s16 }
  0x1f   : > { %v472_v1 = vmul.f32 %v2030_v0, %v2030_v0  ;;  %606 = vmatpush.msra.mxu3 %v512_v13  ;;  %567 = vmatpush.msra.mxu0 %v503_v16  ;;  %v502_v20 = vld [vmem:[%s2405_s6] sm:$0xff]  ;;  %v521_v26 = vld [vmem:[%s2405_s6 + $0x98] sm:$0xff]  ;;  %v520_v30 = vld [vmem:[%s2405_s6 + $0x90] sm:$0xff]  ;;  %s1689_s0 = sshll.u32 %s2192_s18, 3  ;;  %s1516_s16 = sshll.u32 %s1512_s20, 4  ;;  %s1517_s16 = int_to_ptr.hbm [resolvable:$true] %s1516_s16 }
  0x20   : > { %686 = vmatpush.msra.mxu2 %v528_v15  ;;  %587 = vmatpush.msra.mxu1 %v507_v17  ;;  %v506_v21 = vld [vmem:[%s2405_s6 + $0x20] sm:$0xff]  ;;  %v525_v27 = vld [vmem:[%s2405_s6 + $0xb8] sm:$0xff]  ;;  %v524_v32 = vld [vmem:[%s2405_s6 + $0xb0] sm:$0xff]  ;;  %s447_s26 = scalar_lea.vmem [#allocation2], %s1689_s0  ;;  %s1853_s0 = scalar_lea.hbm %s2410_s11, 16 }
  0x21   : > { %v474_v2 = vsel %vm473_vm0, %v472_v1, 0.0  ;;  %v1808_v4 = vpop.eup %1807  ;;  %607 = vmatpush.msra.mxu3 %v511_v18  ;;  %v510_v22 = vld [vmem:[%s2405_s6 + $0x40] sm:$0xff]  ;;  %568 = vmatpush.msra.mxu0 %v502_v20  ;;  %v545_v28 = vld [vmem:[%s2405_s6 + $0x158] sm:$0xff]  ;;  %v544_v33 = vld [vmem:[%s2405_s6 + $0x150] sm:$0xff] }
  0x22   : > { %475 = vadd.xlane.f32.xlu0 %v474_v2  ;;  %v478_v5 = vmul.f32 32.0, %v1808_v4  ;;  %687 = vmatpush.msra.mxu2 %v527_v19  ;;  %v526_v24 = vld [vmem:[%s2405_s6 + $0xc0] sm:$0xff]  ;;  %vm482_vm1 = vweird.f32 %v1808_v4  ;;  %v515_v34 = vld [vmem:[%s2405_s6 + $0x68] sm:$0xff]  ;;  %v533_v55 = vld [vmem:[%s2405_s6 + $0xf8] sm:$0xff] }
  0x23   : > { %588 = vmatpush.msra.mxu1 %v506_v21  ;;  %608 = vmatpush.msra.mxu3 %v510_v22  ;;  %v519_v35 = vld [vmem:[%s2405_s6 + $0x88] sm:$0xff]  ;;  %v514_v39 = vld [vmem:[%s2405_s6 + $0x60] sm:$0xff]  ;;  %v537_v56 = vld [vmem:[%s2405_s6 + $0x118] sm:$0xff] }
  0x24   : > { %v479_v6 = vsub.f32 1.0, %v478_v5  ;;  %688 = vmatpush.msra.mxu2 %v526_v24  ;;  %645 = vmatpush.msrb.mxu0 %v521_v26  ;;  %v523_v36 = vld [vmem:[%s2405_s6 + $0xa8] sm:$0xff]  ;;  %v518_v40 = vld [vmem:[%s2405_s6 + $0x80] sm:$0xff]  ;;  %v541_v57 = vld [vmem:[%s2405_s6 + $0x138] sm:$0xff] }
  0x25   : > { %625 = vmatpush.msrb.mxu3 %v517_v25  ;;  %665 = vmatpush.msrb.mxu1 %v525_v27  ;;  %v543_v37 = vld [vmem:[%s2405_s6 + $0x148] sm:$0xff]  ;;  %v522_v42 = vld [vmem:[%s2405_s6 + $0xa0] sm:$0xff]  ;;  %v532_v58 = vld [vmem:[%s2405_s6 + $0xf0] sm:$0xff] }
  0x26   : > { %v480_v14 = vmul.f32 %v1808_v4, %v479_v6  ;;  %765 = vmatpush.msrb.mxu2 %v545_v28  ;;  %646 = vmatpush.msrb.mxu0 %v520_v30  ;;  %v542_v43 = vld [vmem:[%s2405_s6 + $0x140] sm:$0xff]  ;;  %v536_v59 = vld [vmem:[%s2405_s6 + $0x110] sm:$0xff]  ;;  %v531_v61 = vld [vmem:[%s2405_s6 + $0xe8] sm:$0xff] }
  0x27   : > { %626 = vmatpush.msrb.mxu3 %v516_v29  ;;  %666 = vmatpush.msrb.mxu1 %v524_v32  ;;  %v1805_v51 = vld [vmem:[%s2404_s5] ss:$0 sm:$0xff]  ;;  %v540_v60 = vld [vmem:[%s2405_s6 + $0x130] sm:$0xff]  ;;  %v535_v62 = vld [vmem:[%s2405_s6 + $0x108] sm:$0xff] }
  0x28   : > { %v481_v23 = vadd.f32 %v1808_v4, %v480_v14  ;;  %766 = vmatpush.msrb.mxu2 %v544_v33  ;;  %647 = vmatpush.msrb.mxu0 %v519_v35  ;;  %v539_v63 = vld [vmem:[%s2405_s6 + $0x128] sm:$0xff]  ;;  %v530_v1 = vld [vmem:[%s2405_s6 + $0xe0] sm:$0xff]  ;;  %v548_v5 = vld [vmem:[%s2405_s6 + $0x170] sm:$0xff] }
  0x29   : > { %627 = vmatpush.msrb.mxu3 %v515_v34  ;;  %667 = vmatpush.msrb.mxu1 %v523_v36  ;;  %v534_v2 = vld [vmem:[%s2405_s6 + $0x100] sm:$0xff]  ;;  %v547_v6 = vld [vmem:[%s2405_s6 + $0x168] sm:$0xff] }
  0x2a   : > { %v2101_v31 = vsel %vm482_vm1, %v1808_v4, %v481_v23  ;;  %767 = vmatpush.msrb.mxu2 %v543_v37  ;;  %648 = vmatpush.msrb.mxu0 %v518_v40  ;;  %v538_v3 = vld [vmem:[%s2405_s6 + $0x120] sm:$0xff]  ;;  %v549_v4 = vld [vmem:[%s2405_s6 + $0x178] sm:$0xff] }
  0x2b   : > { %628 = vmatpush.msrb.mxu3 %v514_v39  ;;  %668 = vmatpush.msrb.mxu1 %v522_v42  ;;  %v546_v7 = vld [vmem:[%s2405_s6 + $0x160] sm:$0xff] }
  0x2c   : > { %768 = vmatpush.msrb.mxu2 %v542_v43  ;;  %v795_v8 = vld [vmem:[%s2403_s4] sm:$0xff] }
  0x2d   : > { %v794_v23 = vld [vmem:[%s470_s17] sm:$0xff]  ;;  %s1847_s17 = sshra.s32 %s1517_s16, 4  ;;  %s1848_s17 = int_to_ptr.hbm [resolvable:$true] %s1847_s17 }
  0x2e   : > { %v793_v24 = vld [vmem:[%s466_s19] sm:$0xff]  ;;  %s1849_s2 = scalar_lea.hbm %s1848_s17, 8  ;;  %p1854_p0 = scmp.lt.s32.totalorder %s1848_s17, %s2410_s11 }
  0x2f   : > { %p1850_p11 = scmp.ne.s32.totalorder %s1848_s17, %s1849_s2  ;;  %p1855_p1 = scmp.lt.s32.totalorder %s1853_s0, %s1849_s2 }
  0x31   : > { %p1851_p12 = pnand %p1850_p11, %p2012_p5  ;;  %p1856_p2 = por %p1855_p1, %p1854_p0 }
  0x33   : > { %p1852_p13 = pneg %p1851_p12 }
  0x35   : > { %p1857_p3 = pnand %p1856_p2, %p1852_p13 }
  0x95   : > { %v476_v38 = vpop.xlane.xlu0 %475 }
  0x96   : > { %v484_v41 = vmul.f32 %v2101_v31, %v476_v38 }
  0x98   : > { %v485_v44 = vadd.f32 1e-06, %v484_v41 }
  0x9a   : > { %1809 = vrsqrt.f32 %v485_v44  ;;  %vm492_vm3 = vweird.f32 %v485_v44 }
  0xa0   : > { %v1810_v45 = vpop.eup %1809 }
  0xa1   : > { %v487_v46 = vmul.f32 %v1810_v45, %v485_v44  ;;  %vm493_vm2 = vweird.f32 %v1810_v45 }
  0xa2   : > { %vm494_vm4 = vmor %vm492_vm3, %vm493_vm2 }
  0xa3   : > { %v488_v47 = vmul.f32 %v1810_v45, %v487_v46 }
  0xa5   : > { %v489_v48 = vmul.f32 0.5, %v488_v47 }
  0xa7   : > { %v490_v49 = vsub.f32 1.5, %v489_v48 }
  0xa9   : > { %v491_v50 = vmul.f32 %v1810_v45, %v490_v49 }
  0xab   : > { %v495_v52 = vsel %vm494_vm4, %v1810_v45, %v491_v50 }
  0xac   : > { %v496_v53 = vmul.f32 %v495_v52, %v2030_v0 }
  0xae   : > { %v501_v54 = vmul.f32 %v1805_v51, %v496_v53 }
  0xb0   : > { %1695 = vmatmul.msk.f32.vlgmr.msra.gmra.mxu0 %vm473_vm0, %v501_v54  ;;  %1696 = vmatmul.msk.f32.vlgmr.msra.gmra.mxu1 %vm473_vm0, %v501_v54 }
  0xb1   : > { %1697 = vmatmul.msk.f32.vlgmr.msra.gmra.mxu3 %vm473_vm0, %v501_v54  ;;  %1701 = vmatmul.msk.f32.vlgmr.msra.gmra.mxu2 %vm473_vm0, %v501_v54 }
  0xb2   : > { %705 = vmatpush.msra.mxu3 %v533_v55  ;;  %725 = vmatpush.msra.mxu0 %v537_v56  ;;  %v1005_v56 = vld [vmem:[%s462_s29] sm:$0xff]  ;;  %s1514_s29 = sshll.u32 %s447_s26, 4  ;;  %s1515_s29 = int_to_ptr.vmem [resolvable:$true] %s1514_s29 }
  0xb3   : > { %745 = vmatpush.msra.mxu1 %v541_v57  ;;  %865 = vmatpush.msra.mxu2 %v795_v8  ;;  %v1006_v57 = vmax.f32 %v1005_v56, -3.4028235e+38 }
  0xb4   : > { %706 = vmatpush.msra.mxu3 %v532_v58  ;;  %726 = vmatpush.msra.mxu0 %v536_v59 }
  0xb5   : > { %746 = vmatpush.msra.mxu1 %v540_v60 }
  0xb6   : > { %707 = vmatpush.msra.mxu3 %v531_v61  ;;  %727 = vmatpush.msra.mxu0 %v535_v62 }
  0xb7   : > { %747 = vmatpush.msra.mxu1 %v539_v63 }
  0xb8   : > { %1699 = vmatmul.msk.f32.vlgmr.msrb.gmra.mxu0 %vm473_vm0, %v501_v54  ;;  %1700 = vmatmul.msk.f32.vlgmr.msrb.gmra.mxu1 %vm473_vm0, %v501_v54 }
  0xb9   : > { %1698 = vmatmul.msk.f32.vlgmr.msrb.gmra.mxu3 %vm473_vm0, %v501_v54  ;;  %1705 = vmatmul.msk.f32.vlgmr.msrb.gmra.mxu2 %vm473_vm0, %v501_v54 }
  0xba   : > { %708 = vmatpush.msra.mxu3 %v530_v1  ;;  %728 = vmatpush.msra.mxu0 %v534_v2 }
  0xbb   : > { %748 = vmatpush.msra.mxu1 %v538_v3  ;;  %969 = vmatpush.msrb.mxu2 %v795_v8 }
  0xbc   : > { %785 = vmatpush.msrb.mxu3 %v549_v4  ;;  %819 = vmatpush.msrb.mxu0 %v795_v8 }
  0xbd   : > { %842 = vmatpush.msrb.mxu1 %v795_v8 }
  0xbe   : > { %786 = vmatpush.msrb.mxu3 %v548_v5 }
  0xc0   : > { %787 = vmatpush.msrb.mxu3 %v547_v6  ;;  %1703 = vmatmul.msk.f32.vlgmr.msra.gmra.mxu0 %vm473_vm0, %v501_v54 }
  0xc1   : > { %1704 = vmatmul.msk.f32.vlgmr.msra.gmra.mxu1 %vm473_vm0, %v501_v54  ;;  %1702 = vmatmul.msk.f32.vlgmr.msra.gmra.mxu3 %vm473_vm0, %v501_v54 }
  0xc2   : > { %788 = vmatpush.msrb.mxu3 %v546_v7  ;;  %923 = vmatpush.msra.mxu0 %v795_v8 }
  0xc3   : > { %946 = vmatpush.msra.mxu1 %v795_v8 }
  0xc4   : > { %888 = vmatpush.msra.mxu3 %v795_v8 }
  0xc9   : > { %1706 = vmatmul.msk.f32.vlgmr.msrb.gmra.mxu3 %vm473_vm0, %v501_v54 }
  0xca   : > { %992 = vmatpush.msrb.mxu3 %v795_v8 }
 0x12d   : > { %v570_v9 = vpop.f32.mrf.mxu0  ;;  %v590_v10 = vpop.f32.mrf.mxu1 }
 0x12e   : > { %1707 = vmatmul.msk.f32.vlgmr.msrb.gmra.mxu0 %vm800_vm5, %v570_v9  ;;  %1708 = vmatmul.msk.f32.vlgmr.msrb.gmra.mxu1 %vm800_vm5, %v590_v10  ;;  %v796_v36 = vmul.f32 %v793_v24, %v570_v9  ;;  %v797_v37 = vmul.f32 %v793_v24, %v590_v10 }
 0x134   : > { %v610_v11 = vpop.f32.mrf.mxu3  ;;  %v690_v12 = vpop.f32.mrf.mxu2 }
 0x135   : > { %1709 = vmatmul.msk.f32.vlgmr.msra.gmra.mxu2 %vm800_vm5, %v610_v11  ;;  %v650_v13 = vpop.f32.mrf.mxu0  ;;  %v670_v14 = vpop.f32.mrf.mxu1  ;;  %v903_v43 = vmul.f32 %v793_v24, %v690_v12  ;;  %v798_v47 = vmul.f32 %v793_v24, %v610_v11 }
 0x136   : > { %1711 = vmatmul.msk.f32.vlgmr.msra.gmra.mxu0 %vm800_vm5, %v650_v13  ;;  %1712 = vmatmul.msk.f32.vlgmr.msra.gmra.mxu1 %vm800_vm5, %v670_v14  ;;  %v901_v27 = vmul.f32 %v793_v24, %v650_v13  ;;  %v902_v28 = vmul.f32 %v793_v24, %v670_v14 }
 0x13c   : > { %v630_v15 = vpop.f32.mrf.mxu3  ;;  %v770_v16 = vpop.f32.mrf.mxu2 }
 0x13d   : > { %1737 = vst.msk [vmem:[%s2210_s28 + $0x30] sm:$0xff] %vm800_vm5, %v770_v16  ;;  %1710 = vmatmul.msk.f32.vlgmr.msra.gmra.mxu3 %vm800_vm5, %v630_v15  ;;  %1713 = vmatmul.msk.f32.vlgmr.msrb.gmra.mxu2 %vm800_vm5, %v690_v12  ;;  %v730_v17 = vpop.f32.mrf.mxu0  ;;  %v799_v54 = vmul.f32 %v793_v24, %v630_v15 }
 0x13e   : > { %v750_v18 = vpop.f32.mrf.mxu1  ;;  %1735 = vst.msk [vmem:[%s2210_s28 + $0x20] sm:$0xff] %vm800_vm5, %v730_v17 }
 0x13f   : > { %1736 = vst.msk [vmem:[%s2210_s28 + $0x28] sm:$0xff] %vm800_vm5, %v750_v18 }
 0x144   : > { %v710_v19 = vpop.f32.mrf.mxu3 }
 0x145   : > { %1714 = vmatmul.msk.f32.vlgmr.msrb.gmra.mxu3 %vm800_vm5, %v710_v19  ;;  %v904_v50 = vmul.f32 %v793_v24, %v710_v19 }
 0x14c   : > { %v790_v20 = vpop.f32.mrf.mxu3 }
 0x14d   : > { %1738 = vst.msk [vmem:[%s2210_s28 + $0x38] sm:$0xff] %vm800_vm5, %v790_v20 }
 0x1ab   : > { %v821_v21 = vpop.f32.mrf.mxu0  ;;  %v844_v22 = vpop.f32.mrf.mxu1 }
 0x1ac   : > { %v893_v32 = vmul.f32 %v821_v21, %v794_v23  ;;  %v894_v33 = vmul.f32 %v844_v22, %v794_v23 }
 0x1ae   : > { %v897_v39 = vadd.f32 %v893_v32, %v796_v36  ;;  %v898_v40 = vadd.f32 %v894_v33, %v797_v37 }
 0x1b3   : > { %v925_v25 = vpop.f32.mrf.mxu0  ;;  %v948_v26 = vpop.f32.mrf.mxu1 }
 0x1b4   : > { %v997_v29 = vmul.f32 %v925_v25, %v794_v23  ;;  %v998_v30 = vmul.f32 %v948_v26, %v794_v23 }
 0x1b6   : > { %v1001_v34 = vadd.f32 %v997_v29, %v901_v27  ;;  %v1002_v35 = vadd.f32 %v998_v30, %v902_v28 }
 0x1b8   : > { %1487 = vst.msk [vmem:[%s2210_s28] sm:$0xff] %vm800_vm5, %v1001_v34  ;;  %v867_v38 = vpop.f32.mrf.mxu2  ;;  %1715 = vmatpush.xpose.msk.msrb.mxu0 %vm800_vm5, %v1001_v34  ;;  %1717 = vmatpush.xpose.msk.msrb.mxu1 %vm800_vm5, %v1002_v35 }
 0x1b9   : > { %1488 = vst.msk [vmem:[%s2210_s28 + $0x8] sm:$0xff] %vm800_vm5, %v1002_v35  ;;  %v895_v45 = vmul.f32 %v867_v38, %v794_v23 }
 0x1bb   : > { %1716 = vmatmul.msk.f32.vlgmr.msrb.gmra.mxu0 %vm800_vm5, %v897_v39  ;;  %1718 = vmatmul.msk.f32.vlgmr.msrb.gmra.mxu1 %vm800_vm5, %v898_v40  ;;  %v899_v48 = vadd.f32 %v895_v45, %v798_v47  ;;  %v1256_v45 = vld [vmem:[%s2406_s7 + $0x8] sm:$0xff]  ;;  %v1255_v47 = vld [vmem:[%s2406_s7] sm:$0xff] }
 0x1bc   : > { %1181 = vmatpush.msra.mxu0 %v730_v17  ;;  %1204 = vmatpush.msra.mxu1 %v750_v18 }
 0x1be   : > { %1300 = vmatpush.msrb.mxu1 %v1256_v45  ;;  %1277 = vmatpush.msrb.mxu0 %v1255_v47 }
 0x1c0   : > { %v890_v41 = vpop.f32.mrf.mxu3  ;;  %v971_v42 = vpop.f32.mrf.mxu2 }
 0x1c1   : > { %v999_v44 = vmul.f32 %v971_v42, %v794_v23  ;;  %v896_v52 = vmul.f32 %v890_v41, %v794_v23 }
 0x1c3   : > { %v1003_v46 = vadd.f32 %v999_v44, %v903_v43  ;;  %v900_v55 = vadd.f32 %v896_v52, %v799_v54  ;;  %v1257_v44 = vld [vmem:[%s2406_s7 + $0x10] sm:$0xff] }
 0x1c5   : > { %1489 = vst.msk [vmem:[%s2210_s28 + $0x10] sm:$0xff] %vm800_vm5, %v1003_v46  ;;  %1719 = vmatpush.xpose.msk.msra.mxu2 %vm800_vm5, %v1003_v46  ;;  %v1258_v46 = vld [vmem:[%s2406_s7 + $0x18] sm:$0xff] }
 0x1c8   : > { %v994_v49 = vpop.f32.mrf.mxu3  ;;  %1720 = vmatmul.msk.f32.vlgmr.msra.gmra.mxu2 %vm800_vm5, %v899_v48 }
 0x1c9   : > { %1227 = vmatpush.msrb.mxu2 %v770_v16  ;;  %v1000_v51 = vmul.f32 %v994_v49, %v794_v23 }
 0x1cb   : > { %v1004_v53 = vadd.f32 %v1000_v51, %v904_v50  ;;  %1323 = vmatpush.msra.mxu2 %v1257_v44 }
 0x1cd   : > { %1490 = vst.msk [vmem:[%s2210_s28 + $0x18] sm:$0xff] %vm800_vm5, %v1004_v53  ;;  %1721 = vmatpush.xpose.msk.msra.mxu3 %vm800_vm5, %v1004_v53 }
 0x1d0   : > { %1722 = vmatmul.msk.f32.vlgmr.msra.gmra.mxu3 %vm800_vm5, %v900_v55 }
 0x1d1   : > { %1250 = vmatpush.msrb.mxu3 %v790_v20 }
 0x1d3   : > { %1346 = vmatpush.msra.mxu3 %v1258_v46 }
 0x238   : > { %v1056_v58 = vpop.f32.mrf.mxu1  ;;  %v1030_v5 = vpop.f32.mrf.mxu0 }
 0x239   : > { %v1112_v59 = vmul.f32 0.35355338, %v1056_v58  ;;  %v1111_v7 = vmul.f32 0.35355338, %v1030_v5  ;;  %v1387_v5 = vld [vmem:[%s2408_s9 + $0x30] sm:$0xff] }
 0x23b   : > { %v1116_v60 = vadd.f32 %v1112_v59, %v1006_v57  ;;  %v1115_v9 = vadd.f32 %v1111_v7, %v1006_v57  ;;  %v1386_v7 = vld [vmem:[%s2408_s9 + $0x28] sm:$0xff] }
 0x23d   : > { %v1122_v61 = vsel %vm800_vm5, %v1116_v60, -inf  ;;  %v1119_v10 = vsel %vm800_vm5, %v1115_v9, -inf }
 0x23e   : > { %1123 = vmax.xlane.f32.xlu2 %v1122_v61 }
 0x24b   : > { %v1082_v62 = vpop.f32.mrf.mxu2 }
 0x24c   : > { %v1113_v63 = vmul.f32 0.35355338, %v1082_v62 }
 0x24e   : > { %v1117_v1 = vadd.f32 %v1113_v63, %v1006_v57 }
 0x250   : > { %v1125_v2 = vsel %vm800_vm5, %v1117_v1, -inf }
 0x251   : > { %1126 = vmax.xlane.f32.xlu0 %v1125_v2 }
 0x253   : > { %v1108_v3 = vpop.f32.mrf.mxu3 }
 0x254   : > { %v1114_v4 = vmul.f32 0.35355338, %v1108_v3  ;;  %v1384_v3 = vld [vmem:[%s2408_s9 + $0x18] sm:$0xff] }
 0x256   : > { %v1118_v6 = vadd.f32 %v1114_v4, %v1006_v57  ;;  %v1388_v4 = vld [vmem:[%s2408_s9 + $0x38] sm:$0xff] }
 0x258   : > { %v1128_v8 = vsel %vm800_vm5, %v1118_v6, -inf }
 0x259   : > { %1129 = vmax.xlane.f32.xlu1 %v1128_v8  ;;  %v1381_v8 = vld [vmem:[%s2408_s9] sm:$0xff] }
 0x261   : > { %1120 = vmax.xlane.f32.xlu1 %v1119_v10 }
 0x2b1   : > { %v1124_v11 = vpop.xlane.xlu2 %1123 }
 0x2b2   : > { %v1132_v14 = vsub.f32 %v1116_v60, %v1124_v11 }
 0x2b4   : > { %v1137_v16 = vmul.f32 1.442695, %v1132_v14 }
 0x2c4   : > { %v1127_v12 = vpop.xlane.xlu0 %1126 }
 0x2c5   : > { %v1133_v13 = vsub.f32 %v1117_v1, %v1127_v12 }
 0x2c7   : > { %v1139_v15 = vmul.f32 1.442695, %v1133_v13 }
 0x2c9   : > { %1811 = vpow2.f32 %v1139_v15 }
 0x2ca   : > { %1813 = vpow2.f32 %v1137_v16 }
 0x2cc   : > { %v1130_v17 = vpop.xlane.xlu1 %1129 }
 0x2cd   : > { %v1134_v18 = vsub.f32 %v1118_v6, %v1130_v17  ;;  %v1382_v6 = vld [vmem:[%s2408_s9 + $0x8] sm:$0xff] }
 0x2cf   : > { %v1812_v19 = vpop.eup %1811  ;;  %v1141_v20 = vmul.f32 1.442695, %v1134_v18 }
 0x2d0   : > { %v1149_v21 = vsel %vm800_vm5, %v1812_v19, 0.0  ;;  %v1814_v23 = vpop.eup %1813 }
 0x2d1   : > { %1815 = vpow2.f32 %v1141_v20  ;;  %1150 = vadd.xlane.f32.xlu2 %v1149_v21  ;;  %v1146_v28 = vsel %vm800_vm5, %v1814_v23, 0.0 }
 0x2d4   : > { %v1121_v22 = vpop.xlane.xlu1 %1120 }
 0x2d5   : > { %v1131_v24 = vsub.f32 %v1115_v9, %v1121_v22  ;;  %v1385_v9 = vld [vmem:[%s2408_s9 + $0x20] sm:$0xff] }
 0x2d7   : > { %v1816_v25 = vpop.eup %1815  ;;  %v1135_v26 = vmul.f32 1.442695, %v1131_v24  ;;  %v1458_v24 = vld [vmem:[%s2409_s10 + $0x28] sm:$0xff] }
 0x2d8   : > { %v1152_v27 = vsel %vm800_vm5, %v1816_v25, 0.0 }
 0x2d9   : > { %1817 = vpow2.f32 %v1135_v26  ;;  %1153 = vadd.xlane.f32.xlu0 %v1152_v27  ;;  %1147 = vadd.xlane.f32.xlu2 %v1146_v28  ;;  %v1456_v26 = vld [vmem:[%s2409_s10 + $0x18] sm:$0xff]  ;;  %v1455_v27 = vld [vmem:[%s2409_s10 + $0x10] sm:$0xff]  ;;  %v1454_v28 = vld [vmem:[%s2409_s10 + $0x8] sm:$0xff] }
 0x2df   : > { %v1818_v29 = vpop.eup %1817 }
 0x2e0   : > { %v1143_v30 = vsel %vm800_vm5, %v1818_v29, 0.0 }
 0x2e1   : > { %1144 = vadd.xlane.f32.xlu1 %v1143_v30 }
 0x344   : > { %v1151_v32 = vpop.xlane.xlu2 %1150 }
 0x345   : > { %1819 = vrcp.f32 %v1151_v32 }
 0x34b   : > { %v1820_v33 = vpop.eup %1819 }
 0x34c   : > { %v1161_v34 = vmul.f32 %v1820_v33, %v1812_v19  ;;  %v1154_v35 = vpop.xlane.xlu0 %1153  ;;  %v1148_v36 = vpop.xlane.xlu2 %1147  ;;  %v1806_v19 = vld [vmem:[%s2407_s8] ss:$0 sm:$0xff] }
 0x34d   : > { %1821 = vrcp.f32 %v1154_v35 }
 0x34e   : > { %1823 = vrcp.f32 %v1148_v36  ;;  %1725 = vmatmul.msk.f32.vlgmr.msrb.gmra.mxu2 %vm800_vm5, %v1161_v34 }
 0x353   : > { %v1822_v37 = vpop.eup %1821 }
 0x354   : > { %v1824_v38 = vpop.eup %1823  ;;  %v1162_v39 = vmul.f32 %v1822_v37, %v1816_v25  ;;  %v1145_v40 = vpop.xlane.xlu1 %1144  ;;  %v1457_v25 = vld [vmem:[%s2409_s10 + $0x20] sm:$0xff] }
 0x355   : > { %v1160_v41 = vmul.f32 %v1824_v38, %v1814_v23  ;;  %1825 = vrcp.f32 %v1145_v40  ;;  %v1459_v23 = vld [vmem:[%s2409_s10 + $0x30] sm:$0xff] }
 0x356   : > { %1726 = vmatmul.msk.f32.vlgmr.msrb.gmra.mxu3 %vm800_vm5, %v1162_v39 }
 0x357   : > { %1724 = vmatmul.msk.f32.vlgmr.msra.gmra.mxu1 %vm800_vm5, %v1160_v41 }
 0x358   : > { %1424 = vmatpush.msra.mxu1 %v1388_v4 }
 0x35a   : > { %1425 = vmatpush.msra.mxu1 %v1387_v5 }
 0x35b   : > { %v1826_v42 = vpop.eup %1825 }
 0x35c   : > { %v1159_v43 = vmul.f32 %v1826_v42, %v1818_v29  ;;  %1426 = vmatpush.msra.mxu1 %v1386_v7  ;;  %v1453_v29 = vld [vmem:[%s2409_s10] sm:$0xff] }
 0x35e   : > { %1723 = vmatmul.msk.f32.vlgmr.msra.gmra.mxu0 %vm800_vm5, %v1159_v43  ;;  %1427 = vmatpush.msra.mxu1 %v1385_v9 }
 0x35f   : > { %1404 = vmatpush.msra.mxu0 %v1384_v3 }
 0x3d1   : > { %v1229_v48 = vpop.f32.mrf.mxu2 }
 0x3d2   : > { %1729 = vmatmul.msk.f32.vlgmr.msra.gmra.mxu2 %vm800_vm5, %v1229_v48 }
 0x3d4   : > { %v1206_v49 = vpop.f32.mrf.mxu1 }
 0x3d5   : > { %1728 = vmatmul.msk.f32.vlgmr.msrb.gmra.mxu1 %vm800_vm5, %v1206_v49 }
 0x3d9   : > { %v1252_v50 = vpop.f32.mrf.mxu3 }
 0x3da   : > { %1730 = vmatmul.msk.f32.vlgmr.msra.gmra.mxu3 %vm800_vm5, %v1252_v50 }
 0x3db   : > { %v1183_v51 = vpop.f32.mrf.mxu0 }
 0x3dc   : > { %1727 = vmatmul.msk.f32.vlgmr.msrb.gmra.mxu0 %vm800_vm5, %v1183_v51 }
 0x452   : > { %v1302_v52 = vpop.f32.mrf.mxu1 }
 0x453   : > { %v1352_v55 = vsel %vm473_vm0, %v1302_v52, 0.0 }
 0x455   : > { %v1325_v53 = vpop.f32.mrf.mxu2 }
 0x456   : > { %v1354_v58 = vsel %vm473_vm0, %v1325_v53, 0.0 }
 0x459   : > { %v1279_v54 = vpop.f32.mrf.mxu0 }
 0x45a   : > { %v1351_v56 = vsel %vm473_vm0, %v1279_v54, 0.0 }
 0x45b   : > { %v1353_v57 = vadd.f32 %v1352_v55, %v1351_v56 }
 0x45d   : > { %v1348_v59 = vpop.f32.mrf.mxu3  ;;  %v1355_v60 = vadd.f32 %v1354_v58, %v1353_v57 }
 0x45e   : > { %v1356_v61 = vsel %vm473_vm0, %v1348_v59, 0.0 }
 0x45f   : > { %v1357_v62 = vadd.f32 %v1356_v61, %v1355_v60 }
 0x461   : > { %v2284_v63 = vadd.f32 %v1357_v62, %v2030_v0  ;;  %v1383_v0 = vld [vmem:[%s2408_s9 + $0x10] sm:$0xff] }
 0x462   : > { %1405 = vmatpush.msra.mxu0 %v1383_v0 }
 0x463   : > { %v1359_v1 = vmul.f32 %v2284_v63, %v2284_v63 }
 0x464   : > { %1406 = vmatpush.msra.mxu0 %v1382_v6 }
 0x465   : > { %v1360_v2 = vsel %vm473_vm0, %v1359_v1, 0.0 }
 0x466   : > { %1361 = vadd.xlane.f32.xlu0 %v1360_v2  ;;  %1407 = vmatpush.msra.mxu0 %v1381_v8 }
 0x4d9   : > { %v1362_v10 = vpop.xlane.xlu0 %1361 }
 0x4da   : > { %v1363_v11 = vmul.f32 %v1362_v10, %v2101_v31  ;;  %v1460_v31 = vld [vmem:[%s2409_s10 + $0x38] sm:$0xff] }
 0x4db   : > { %1473 = vmatpush.msrb.mxu2 %v1460_v31 }
 0x4dc   : > { %v1364_v12 = vadd.f32 1e-06, %v1363_v11 }
 0x4dd   : > { %1474 = vmatpush.msrb.mxu2 %v1459_v23 }
 0x4de   : > { %1827 = vrsqrt.f32 %v1364_v12  ;;  %vm1371_vm7 = vweird.f32 %v1364_v12 }
 0x4df   : > { %1475 = vmatpush.msrb.mxu2 %v1458_v24 }
 0x4e1   : > { %1476 = vmatpush.msrb.mxu2 %v1457_v25 }
 0x4e3   : > { %1477 = vmatpush.msrb.mxu2 %v1456_v26 }
 0x4e4   : > { %v1828_v13 = vpop.eup %1827 }
 0x4e5   : > { %v1366_v14 = vmul.f32 %v1828_v13, %v1364_v12  ;;  %vm1372_vm6 = vweird.f32 %v1828_v13  ;;  %1478 = vmatpush.msrb.mxu2 %v1455_v27 }
 0x4e6   : > { %vm1373_vm8 = vmor %vm1371_vm7, %vm1372_vm6 }
 0x4e7   : > { %v1367_v15 = vmul.f32 %v1828_v13, %v1366_v14  ;;  %1479 = vmatpush.msrb.mxu2 %v1454_v28 }
 0x4e9   : > { %v1368_v16 = vmul.f32 0.5, %v1367_v15  ;;  %1480 = vmatpush.msrb.mxu2 %v1453_v29 }
 0x4eb   : > { %v1369_v17 = vsub.f32 1.5, %v1368_v16 }
 0x4ed   : > { %v1370_v18 = vmul.f32 %v1828_v13, %v1369_v17 }
 0x4ef   : > { %v1374_v20 = vsel %vm1373_vm8, %v1828_v13, %v1370_v18 }
 0x4f0   : > { %v1375_v21 = vmul.f32 %v1374_v20, %v2284_v63 }
 0x4f2   : > { %v1380_v22 = vmul.f32 %v1806_v19, %v1375_v21 }
 0x4f4   : > { %1731 = vmatmul.msk.f32.vlgmr.msra.gmra.mxu0 %vm473_vm0, %v1380_v22  ;;  %1732 = vmatmul.msk.f32.vlgmr.msra.gmra.mxu1 %vm473_vm0, %v1380_v22 }
 0x571   : > { %v1409_v30 = vpop.f32.mrf.mxu0  ;;  %v1429_v46 = vpop.f32.mrf.mxu1 }
 0x572   : > { %v1733_v32 = vmul.f32 -1.442695, %v1409_v30 }
 0x574   : > { %1829 = vpow2.f32 %v1733_v32 }
 0x57a   : > { %v1830_v33 = vpop.eup %1829 }
 0x57b   : > { %v1435_v34 = vadd.f32 1.0, %v1830_v33 }
 0x57d   : > { %1831 = vrcp.f32 %v1435_v34  ;;  %v1447_v38 = vand.u32 2147483648, %v1435_v34  ;;  %v1445_v40 = vand.u32 2147483647, %v1435_v34  ;;  %vm1441_vm10 = vweird.f32 %v1435_v34 }
 0x57f   : > { %v1448_v42 = vor.u32 1.1754944e-38, %v1447_v38  ;;  %vm1446_vm12 = vcmp.eq.f32.partialorder %v1445_v40, 8.507059e+37 }
 0x583   : > { %v1832_v35 = vpop.eup %1831 }
 0x584   : > { %v1437_v36 = vmul.f32 %v1832_v35, %v1435_v34  ;;  %vm1442_vm9 = vweird.f32 %v1832_v35 }
 0x585   : > { %vm1443_vm11 = vmor %vm1441_vm10, %vm1442_vm9 }
 0x586   : > { %v1438_v37 = vsub.f32 1.0, %v1437_v36 }
 0x588   : > { %v1439_v39 = vmul.f32 %v1832_v35, %v1438_v37 }
 0x58a   : > { %v1440_v41 = vadd.f32 %v1832_v35, %v1439_v39 }
 0x58c   : > { %v1444_v43 = vsel %vm1443_vm11, %v1832_v35, %v1440_v41 }
 0x58d   : > { %v1449_v44 = vsel %vm1446_vm12, %v1448_v42, %v1444_v43 }
 0x58e   : > { %v1451_v45 = vmul.f32 %v1449_v44, %v1409_v30 }
 0x590   : > { %v1452_v47 = vmul.f32 %v1451_v45, %v1429_v46 }
 0x592   : > { %1734 = vmatmul.msk.f32.vlgmr.msrb.gmra.mxu2 %vm1461_vm13, %v1452_v47 }
 0x615   : > { %v1482_v48 = vpop.f32.mrf.mxu2 }
 0x616   : > { %v1485_v49 = vadd.f32 %v1482_v48, %v2284_v63 }
 0x618   : > { %1486 = vst.msk [vmem:[%s447_s26] sm:$0xff] %vm473_vm0, %v1485_v49 }
 0x619   : > { %1860 = shalt.err (!%p1857_p3)
}
 0x61a   : > { %1747 = dma.vmem_to_hbm [thread:$0]  (%p2012_p5), %s1515_s29, 128, %s1517_s16, %s1497_s15  }
 0x61b   : > { %s1502_s26 = scalar_lea.sflag [#allocation5], %s2192_s18 }
 0x61c   : > { %s1746_s1 = sshll.u32 %s1995_s25, 5  ;;  %s1538_s30 = sshll.u32 %s2210_s28, 4  ;;  %s1539_s30 = int_to_ptr.vmem [resolvable:$true] %s1538_s30 }
 0x61d   : > { %s1527_s0 = scalar_lea.hbm %s2411_s12, %s1746_s1  ;;  %s1902_s29 = smov 512  }
 0x61e   : > { %s1540_s19 = sshll.u32 %s1527_s0, 4  ;;  %1748 = sst [smem:[#allocation7]] (%p2012_p5), %s1902_s29  ;;  %s1541_s19 = int_to_ptr.hbm [resolvable:$true] %s1540_s19 }
 0x61f   : > { %s1903_s18 = smov 1024   ;;  %s1904_s16 = smov 4  }
 0x620   : > { %1749 = sst [smem:[#allocation7 + $0x1]] (%p2012_p5), %s1903_s18  ;;  %s1905_s25 = smov 128  }
 0x621   : > { %1750 = sst [smem:[#allocation7 + $0x2]] (%p2012_p5), %s1904_s16  ;;  %s1906_s28 = smov 8  }
 0x622   : > { %1751 = sst [smem:[#allocation7 + $0x3]] (%p2012_p5), %s1905_s25  ;;  %s1907_s15 = smov [#allocation6]  }
 0x623   : > { %1752 = sst [smem:[#allocation7 + $0x4]] (%p2012_p5), %s1905_s25  ;;  %s1908_s20 = smov 0  }
 0x624   : > { %1753 = sst [smem:[#allocation7 + $0x5]] (%p2012_p5), %s1906_s28 }
 0x625   : > { %1754 = dma.general (%p2012_p5), %s1539_s30, 1024, %s1541_s19, %s1502_s26, %s1907_s15, [#allocation7], %s1908_s20, 0  }
 0x626 PF: > { %p1764_p4 = scmp.ge.s32.totalorder %s1899_s24, 2  ;;  %s1568_s1 = sand.u32 1, %s1887_s21  }
 0x627   : > { %s1569_s17 = scalar_lea.sflag [#allocation3], %s1568_s1 }
 0x628   : > { %p1758_p7 = pnand %p1764_p4, %p2016_p6 }
 0x62a   : > { %p1759_p8 = pneg %p1758_p7 }
 0x62c   : > { %1878 = dma.done.wait (%p1759_p8), %s1569_s17, 128  }
 0x62d   : > { %1880 = vsyncadd (%p1759_p8), %s1569_s17, 4294967168  ;;  %s1579_s2 = scalar_lea.sflag [#allocation5], %s1568_s1 }
 0x62e   : > { %1882 = dma.done.wait (%p1759_p8), %s1579_s2, 1024  }
 0x62f   : > { %1884 = vsyncadd (%p1759_p8), %s1579_s2, 4294966272  ;;  %s2421_s13 = sld [smem:[#allocation10_spill]]  ;;  %p26_p5 = scmp.ge.s32.totalorder %s1999_s27, 4  }
 0x630   : > { %s2422_s21 = smov %s1891_s22  ;;  %s2423_s22 = smov %s1895_s23 }
 0x631   : > { %s2425_s24 = smov %s1999_s27  ;;  %28 = sbr.rel (!%p26_p5) target bundleno = 9 (0x9), region = 131 }
 0x635   : > { %s2424_s23 = smov %s2421_s13 }
 0x636   :  { %1585 = vsyncpa [#allocation3], 1 }
 0x637   :  { %1587 = vsyncpa [#allocation3 + $0x1], 1 }
 0x638   :  { %1588 = vsyncpa [#allocation5], 1 }
 0x639   :  { %1590 = vsyncpa [#allocation5 + $0x1], 1 }

</bundles_post_ra>
